<compile_context>
chip_gen: v7x
topology: tpu7x:2x2x1
jax: 0.10.0
libtpu: 0.0.40
codegen_flags: <defaults>
</compile_context>

<pallas_src>
import functools

import jax
import jax.numpy as jnp
from jax.experimental import pallas as pl
from jax.experimental.pallas import tpu as pltpu

_VMEM_LIMIT = 32 * 1024 * 1024   # safe on v5e/v6e (128 MiB) and v7x (64 MiB)


def _round_up(x, m):
    return ((x + m - 1) // m) * m


# -----------------------------------------------------------------------------
# Kernel 1: edge stage.  Reduction over vertex tiles -> edge features Y,
# attention weights exp_s, and pre-scaled edge features Ys = (exp_s @ E) * Y.
# -----------------------------------------------------------------------------
def _edge_kernel(x_ref, h_ref, w_ref, b_ref, invdeg_ref, a_ref, e_ref,
                 ys_ref, es_ref, acc_ref, *, neg_slope: float):
    t = pl.program_id(0)

    @pl.when(t == 0)
    def _():
        acc_ref[...] = jnp.zeros_like(acc_ref)

    # theta: X_tile @ W + b  (f32), then v2e partial sum H_tile^T @ XW (bf16 MXU)
    xw = jnp.dot(x_ref[...], w_ref[...],
                 preferred_element_type=jnp.float32) + b_ref[...]
    acc_ref[...] += jax.lax.dot_general(
        h_ref[...], xw.astype(jnp.bfloat16),
        (((0,), (0,)), ((), ())),                    # contract the vertex axis
        preferred_element_type=jnp.float32)

    @pl.when(t == pl.num_programs(0) - 1)
    def _():
        # v2e "mean"
        y = acc_ref[...] * invdeg_ref[...]                               # (M, C)
        # per-head edge attention logit: LeakyReLU(Y @ A)  (block-diagonal A)
        s = jnp.dot(y, a_ref[...], preferred_element_type=jnp.float32)   # (M, H)
        s = jnp.where(s >= 0.0, s, neg_slope * s)
        # per-head global shift: softmax-invariant, overflow-proof.
        s = s - jnp.max(s, axis=0, keepdims=True)
        exp_s = jnp.exp(s)                                               # (M, H)
        es_ref[...] = exp_s.astype(es_ref.dtype)
        sexp = jnp.dot(exp_s, e_ref[...],
                       preferred_element_type=jnp.float32)               # (M, C)
        ys_ref[...] = (y * sexp).astype(ys_ref.dtype)


# -----------------------------------------------------------------------------
# Kernel 2: vertex stage.  Parallel over vertex tiles:
# out = (H @ Ys) / ((H @ exp_s) @ E), then ELU.
# -----------------------------------------------------------------------------
def _vertex_kernel(h_ref, ys_ref, es_ref, e_ref, o_ref, *, apply_act: bool):
    h = h_ref[...]                                                       # (T, M)
    agg = jnp.dot(h, ys_ref[...], preferred_element_type=jnp.float32)    # (T, C)
    den = jnp.dot(h, es_ref[...], preferred_element_type=jnp.float32)    # (T, H)
    den = jnp.dot(den, e_ref[...], preferred_element_type=jnp.float32)   # (T, C)
    out = agg * pl.reciprocal(jnp.maximum(den, 1e-12), approx=True)
    if apply_act:
        # ELU(alpha=1)
        out = jnp.where(out > 0.0, out, jnp.exp(jnp.minimum(out, 0.0)) - 1.0)
    o_ref[...] = out.astype(o_ref.dtype)


# -----------------------------------------------------------------------------
# One (multi-head-fused) UniGATConv layer == two pallas_calls.
# -----------------------------------------------------------------------------
def unigat_conv(X, H_bf16, inv_deg, W, b, A, E, *,
                neg_slope: float = 0.2, apply_act: bool = True,
                max_tile_n: int = 256):
    N, Cin = X.shape
    M = H_bf16.shape[1]
    C = W.shape[1]
    nH = A.shape[1]

    # vertex-axis tiling (sublane-aligned, zero-padded rows; zero H rows are
    # inert in the edge reduction and produce out=0 rows that are sliced off).
    tile_n = min(max_tile_n, _round_up(N, 8))
    Np = _round_up(N, tile_n)
    if Np != N:
        X = jnp.pad(X, ((0, Np - N), (0, 0)))
        H_bf16 = jnp.pad(H_bf16, ((0, Np - N), (0, 0)))
    grid_n = Np // tile_n

    edge_kernel = functools.partial(_edge_kernel, neg_slope=neg_slope)
    ys, es = pl.pallas_call(
        edge_kernel,
        grid=(grid_n,),
        in_specs=[
            pl.BlockSpec((tile_n, Cin), lambda t: (t, 0)),   # X tile
            pl.BlockSpec((tile_n, M), lambda t: (t, 0)),     # H tile (bf16)
            pl.BlockSpec((Cin, C), lambda t: (0, 0)),        # W (heads stacked)
            pl.BlockSpec((1, C), lambda t: (0, 0)),          # b
            pl.BlockSpec((M, 1), lambda t: (0, 0)),          # inv_deg
            pl.BlockSpec((C, nH), lambda t: (0, 0)),         # A (block-diag)
            pl.BlockSpec((nH, C), lambda t: (0, 0)),         # E (expansion)
        ],
        out_specs=[
            pl.BlockSpec((M, C), lambda t: (0, 0)),
            pl.BlockSpec((M, nH), lambda t: (0, 0)),
        ],
        out_shape=[
            jax.ShapeDtypeStruct((M, C), jnp.bfloat16),
            jax.ShapeDtypeStruct((M, nH), jnp.bfloat16),
        ],
        scratch_shapes=[pltpu.VMEM((M, C), jnp.float32)],
        compiler_params=pltpu.CompilerParams(
            dimension_semantics=("arbitrary",),              # reduction axis
            vmem_limit_bytes=_VMEM_LIMIT),
    )(X, H_bf16, W, b, inv_deg, A, E)

    vertex_kernel = functools.partial(_vertex_kernel, apply_act=apply_act)
    # NOTE: output lane width = heads*hid (or num_classes); at the demo sizes
    # this is < 128 (masked stores) — acceptable for the classifier per review.
    out = pl.pallas_call(
        vertex_kernel,
        grid=(grid_n,),
        in_specs=[
            pl.BlockSpec((tile_n, M), lambda t: (t, 0)),     # H tile (bf16)
            pl.BlockSpec((M, C), lambda t: (0, 0)),          # Ys
            pl.BlockSpec((M, nH), lambda t: (0, 0)),         # exp_s
            pl.BlockSpec((nH, C), lambda t: (0, 0)),         # E
        ],
        out_specs=pl.BlockSpec((tile_n, C), lambda t: (t, 0)),
        out_shape=jax.ShapeDtypeStruct((Np, C), jnp.float32),
        compiler_params=pltpu.CompilerParams(
            dimension_semantics=("parallel",),               # megacore on v7x
            vmem_limit_bytes=_VMEM_LIMIT),
    )(H_bf16, ys, es, E)

    return out[:N]


# -----------------------------------------------------------------------------
# Head fusion: stack per-head (W, b, a) into one layer's parameters.
# -----------------------------------------------------------------------------
def _stack_heads(head_params):
    hid = head_params[0][0].shape[1]
    nH = len(head_params)
    Ws = jnp.concatenate([W for (W, _, _) in head_params], axis=1)   # (Cin, nH*hid)
    bs = jnp.concatenate([b for (_, b, _) in head_params], axis=1)   # (1, nH*hid)
    A = jnp.zeros((nH * hid, nH), jnp.float32)                       # block-diag
    E = jnp.zeros((nH, nH * hid), jnp.float32)                       # expansion
    for h, (_, _, a) in enumerate(head_params):
        A = A.at[h * hid:(h + 1) * hid, h].set(a[:, 0])
        E = E.at[h, h * hid:(h + 1) * hid].set(1.0)
    return Ws, bs, A, E


# -----------------------------------------------------------------------------
# UniGAT model: fused multi-head UniGATConv (concat) -> UniGATConv classifier
# -----------------------------------------------------------------------------
def unigat_forward(X, H, params, *, neg_slope: float = 0.2):
    # structural quantities: computed once, shared by both layers / all heads
    Hb = H.astype(jnp.bfloat16)                       # exact for 0/1 incidence
    inv_deg = (1.0 / jnp.maximum(H.sum(axis=0), 1.0))[:, None].astype(jnp.float32)

    # self.drop_layer: identity in eval mode
    Ws, bs, A, E = _stack_heads(params["heads"])
    Xh = unigat_conv(X, Hb, inv_deg, Ws, bs, A, E,
                     neg_slope=neg_slope, apply_act=True)   # == concat of heads
    # self.drop_layer: identity in eval mode
    W2, b2, a2 = params["out"]
    E2 = jnp.ones((1, W2.shape[1]), jnp.float32)
    return unigat_conv(Xh, Hb, inv_deg, W2, b2, a2, E2,
                       neg_slope=neg_slope, apply_act=True)


# -----------------------------------------------------------------------------
# Pure-JAX f32 reference (per-head, for correctness checking)
# -----------------------------------------------------------------------------
def _ref_conv(X, H, W, b, a, neg_slope, apply_act):
    XW = X @ W + b
    deg_e = jnp.maximum(H.sum(axis=0), 1.0)
    Y = (H.T @ XW) / deg_e[:, None]
    s = Y @ a
    s = jnp.where(s >= 0.0, s, neg_slope * s)[:, 0]
    p = H * jnp.exp(s - jnp.max(s))[None, :]
    den = jnp.maximum(p.sum(axis=1, keepdims=True), 1e-12)
    out = (p / den) @ Y
    if apply_act:
        out = jnp.where(out > 0.0, out, jnp.exp(jnp.minimum(out, 0.0)) - 1.0)
    return out


def unigat_forward_ref(X, H, params, *, neg_slope: float = 0.2):
    head_outs = [_ref_conv(X, H, W, b, a, neg_slope, True)
                 for (W, b, a) in params["heads"]]
    Xh = jnp.concatenate(head_outs, axis=-1)
    W2, b2, a2 = params["out"]
    return _ref_conv(Xh, H, W2, b2, a2, neg_slope, True)


# -----------------------------------------------------------------------------
# Deterministic parameter init (matches the module's __init__ shapes)
# -----------------------------------------------------------------------------
def init_params(key, in_ch, hid_ch, num_classes, num_heads):
    keys = list(jax.random.split(key, 3 * num_heads + 3))
    it = iter(keys)

    def linear(kw, kb, fan_in, fan_out):
        bound = 1.0 / jnp.sqrt(jnp.float32(fan_in))
        Wl = jax.random.uniform(kw, (fan_in, fan_out), jnp.float32, -bound, bound)
        bl = jax.random.uniform(kb, (1, fan_out), jnp.float32, -bound, bound)
        return Wl, bl

    heads = []
    for _ in range(num_heads):
        W, b = linear(next(it), next(it), in_ch, hid_ch)
        bound = 1.0 / jnp.sqrt(jnp.float32(hid_ch))
        a = jax.random.uniform(next(it), (hid_ch, 1), jnp.float32, -bound, bound)
        heads.append((W, b, a))

    W2, b2 = linear(next(it), next(it), hid_ch * num_heads, num_classes)
    bound = 1.0 / jnp.sqrt(jnp.float32(num_classes))
    a2 = jax.random.uniform(next(it), (num_classes, 1), jnp.float32, -bound, bound)
    return {"heads": heads, "out": (W2, b2, a2)}


# -----------------------------------------------------------------------------
if __name__ == "__main__":
    key = jax.random.PRNGKey(0)
    N, M = 16, 8                       # vertices, hyperedges
    in_ch, hid_ch, num_classes, num_heads = 8, 16, 4, 2

    kx, kh, kp = jax.random.split(key, 3)
    X = jax.random.normal(kx, (N, in_ch), jnp.float32)

    # random incidence matrix; guarantee every vertex / edge is covered
    Hm = (jax.random.uniform(kh, (N, M)) < 0.4).astype(jnp.float32)
    Hm = Hm.at[jnp.arange(N), jnp.arange(N) % M].set(1.0)

    params = init_params(kp, in_ch, hid_ch, num_classes, num_heads)

    fwd = jax.jit(unigat_forward)
    out = jax.block_until_ready(fwd(X, Hm, params))

    ref = unigat_forward_ref(X, Hm, params)
    assert out.shape == (N, num_classes), out.shape
    assert bool(jnp.all(jnp.isfinite(out)))
    # kernel uses bf16 incidence/edge-features with f32 accumulation -> small
    # numerical difference vs the pure-f32 reference
    assert bool(jnp.allclose(out, ref, atol=3e-2, rtol=3e-2)), (out, ref)

    print("KERNEL_OK")
</pallas_src>

<mosaic_0001>
module attributes {stable_mosaic.version = 11 : i64} {
  func.func @_vertex_kernel(%arg0: i32, %arg1: memref<16x8xbf16, #tpu.memory_space<vmem>>, %arg2: memref<8x32xbf16, #tpu.memory_space<vmem>>, %arg3: memref<8x2xbf16, #tpu.memory_space<vmem>>, %arg4: memref<2x32xf32, #tpu.memory_space<vmem>>, %arg5: memref<16x32xf32, #tpu.memory_space<vmem>>) attributes {dimension_semantics = [#tpu.dimension_semantics<parallel>], iteration_bounds = array<i64: 1>, scalar_prefetch = 0 : i64, scratch_operands = 0 : i64, tpu.core_type = #tpu.core_type<tc>, window_params = [{transform_indices = @transform_0, window_bounds = array<i64: 16, 8>}, {pipeline_mode = #tpu.pipeline_mode<synchronous>, transform_indices = @transform_1, window_bounds = array<i64: 8, 32>}, {pipeline_mode = #tpu.pipeline_mode<synchronous>, transform_indices = @transform_2, window_bounds = array<i64: 8, 2>}, {pipeline_mode = #tpu.pipeline_mode<synchronous>, transform_indices = @transform_3, window_bounds = array<i64: 2, 32>}, {transform_indices = @transform_4, window_bounds = array<i64: 16, 32>}]} {
    %c0 = arith.constant 0 : index
    %c0_0 = arith.constant 0 : index
    %0 = vector.load %arg1[%c0, %c0_0] : memref<16x8xbf16, #tpu.memory_space<vmem>>, vector<16x8xbf16>
    %c0_1 = arith.constant 0 : index
    %c0_2 = arith.constant 0 : index
    %1 = vector.load %arg2[%c0_1, %c0_2] : memref<8x32xbf16, #tpu.memory_space<vmem>>, vector<8x32xbf16>
    %cst = arith.constant dense<0.000000e+00> : vector<16x32xf32>
    %2 = tpu.matmul %0, %1, %cst {dimension_numbers = #tpu.dot_dimension_numbers<[1], [0], [0], [1], [0, 0, 1, 1], [], []>} : vector<16x8xbf16>, vector<8x32xbf16>, vector<16x32xf32> -> vector<16x32xf32>
    %c0_3 = arith.constant 0 : index
    %c0_4 = arith.constant 0 : index
    %3 = vector.load %arg3[%c0_3, %c0_4] : memref<8x2xbf16, #tpu.memory_space<vmem>>, vector<8x2xbf16>
    %cst_5 = arith.constant dense<0.000000e+00> : vector<16x2xf32>
    %4 = tpu.matmul %0, %3, %cst_5 {dimension_numbers = #tpu.dot_dimension_numbers<[1], [0], [0], [1], [0, 0, 1, 1], [], []>} : vector<16x8xbf16>, vector<8x2xbf16>, vector<16x2xf32> -> vector<16x2xf32>
    %c0_6 = arith.constant 0 : index
    %c0_7 = arith.constant 0 : index
    %5 = vector.load %arg4[%c0_6, %c0_7] : memref<2x32xf32, #tpu.memory_space<vmem>>, vector<2x32xf32>
    %cst_8 = arith.constant dense<0.000000e+00> : vector<16x32xf32>
    %6 = tpu.matmul %4, %5, %cst_8 {dimension_numbers = #tpu.dot_dimension_numbers<[1], [0], [0], [1], [0, 0, 1, 1], [], []>} : vector<16x2xf32>, vector<2x32xf32>, vector<16x32xf32> -> vector<16x32xf32>
    %cst_9 = arith.constant 9.99999996E-13 : f32
    %7 = vector.broadcast %cst_9 : f32 to vector<16x32xf32>
    %8 = arith.maximumf %6, %7 : vector<16x32xf32>
    %9 = tpu.reciprocal %8 {approx = true} : vector<16x32xf32> -> vector<16x32xf32>
    %10 = arith.mulf %2, %9 : vector<16x32xf32>
    %cst_10 = arith.constant 0.000000e+00 : f32
    %11 = vector.broadcast %cst_10 : f32 to vector<16x32xf32>
    %12 = arith.cmpf ogt, %10, %11 : vector<16x32xf32>
    %cst_11 = arith.constant 0.000000e+00 : f32
    %13 = vector.broadcast %cst_11 : f32 to vector<16x32xf32>
    %14 = arith.minimumf %10, %13 : vector<16x32xf32>
    %15 = math.exp %14 : vector<16x32xf32>
    %cst_12 = arith.constant 1.000000e+00 : f32
    %16 = vector.broadcast %cst_12 : f32 to vector<16x32xf32>
    %17 = arith.subf %15, %16 : vector<16x32xf32>
    %18 = arith.select %12, %10, %17 : vector<16x32xi1>, vector<16x32xf32>
    %c0_13 = arith.constant 0 : index
    %c0_14 = arith.constant 0 : index
    %19 = vector.load %arg5[%c0_13, %c0_14] : memref<16x32xf32, #tpu.memory_space<vmem>>, vector<16x32xf32>
    tpu.vector_store %arg5[%c0_13, %c0_14], %18 {strides = array<i32>} : memref<16x32xf32, #tpu.memory_space<vmem>>, vector<16x32xf32>,
    return
  }
  func.func @transform_0(%arg0: i32) -> (i32, i32) {
    %c0_i32 = arith.constant 0 : i32
    %c0_i32_0 = arith.constant 0 : i32
    return %arg0, %c0_i32 : i32, i32
  }
  func.func @transform_1(%arg0: i32) -> (i32, i32) {
    %c0_i32 = arith.constant 0 : i32
    %c0_i32_0 = arith.constant 0 : i32
    %c0_i32_1 = arith.constant 0 : i32
    return %c0_i32, %c0_i32_0 : i32, i32
  }
  func.func @transform_2(%arg0: i32) -> (i32, i32) {
    %c0_i32 = arith.constant 0 : i32
    %c0_i32_0 = arith.constant 0 : i32
    %c0_i32_1 = arith.constant 0 : i32
    return %c0_i32, %c0_i32_0 : i32, i32
  }
  func.func @transform_3(%arg0: i32) -> (i32, i32) {
    %c0_i32 = arith.constant 0 : i32
    %c0_i32_0 = arith.constant 0 : i32
    %c0_i32_1 = arith.constant 0 : i32
    return %c0_i32, %c0_i32_0 : i32, i32
  }
  func.func @transform_4(%arg0: i32) -> (i32, i32) {
    %c0_i32 = arith.constant 0 : i32
    %c0_i32_0 = arith.constant 0 : i32
    return %arg0, %c0_i32 : i32, i32
  }
}

module attributes {stable_mosaic.version = 11 : i64} {
  func.func @_edge_kernel(%arg0: i32, %arg1: memref<16x8xf32, #tpu.memory_space<vmem>>, %arg2: memref<16x8xbf16, #tpu.memory_space<vmem>>, %arg3: memref<8x32xf32, #tpu.memory_space<vmem>>, %arg4: memref<1x32xf32, #tpu.memory_space<vmem>>, %arg5: memref<8x1xf32, #tpu.memory_space<vmem>>, %arg6: memref<32x2xf32, #tpu.memory_space<vmem>>, %arg7: memref<2x32xf32, #tpu.memory_space<vmem>>, %arg8: memref<8x32xbf16, #tpu.memory_space<vmem>>, %arg9: memref<8x2xbf16, #tpu.memory_space<vmem>>, %arg10: memref<8x32xf32, #tpu.memory_space<vmem>>) attributes {dimension_semantics = [#tpu.dimension_semantics<arbitrary>], iteration_bounds = array<i64: 1>, scalar_prefetch = 0 : i64, scratch_operands = 1 : i64, tpu.core_type = #tpu.core_type<tc>, window_params = [{transform_indices = @transform_0, window_bounds = array<i64: 16, 8>}, {transform_indices = @transform_1, window_bounds = array<i64: 16, 8>}, {pipeline_mode = #tpu.pipeline_mode<synchronous>, transform_indices = @transform_2, window_bounds = array<i64: 8, 32>}, {pipeline_mode = #tpu.pipeline_mode<synchronous>, transform_indices = @transform_3, window_bounds = array<i64: 1, 32>}, {pipeline_mode = #tpu.pipeline_mode<synchronous>, transform_indices = @transform_4, window_bounds = array<i64: 8, 1>}, {pipeline_mode = #tpu.pipeline_mode<synchronous>, transform_indices = @transform_5, window_bounds = array<i64: 32, 2>}, {pipeline_mode = #tpu.pipeline_mode<synchronous>, transform_indices = @transform_6, window_bounds = array<i64: 2, 32>}, {pipeline_mode = #tpu.pipeline_mode<synchronous>, transform_indices = @transform_7, window_bounds = array<i64: 8, 32>}, {pipeline_mode = #tpu.pipeline_mode<synchronous>, transform_indices = @transform_8, window_bounds = array<i64: 8, 2>}]} {
    %c0_i32 = arith.constant 0 : i32
    %0 = arith.cmpi eq, %arg0, %c0_i32 : i32
    %1 = arith.extui %0 : i1 to i32
    %c0_i32_0 = arith.constant 0 : i32
    %2 = arith.cmpi ne, %1, %c0_i32_0 : i32
    scf.if %2 {
      %cst_15 = arith.constant 0.000000e+00 : f32
      %18 = vector.broadcast %cst_15 : f32 to vector<8x32xf32>
      %c0_16 = arith.constant 0 : index
      %c0_17 = arith.constant 0 : index
      %19 = vector.load %arg10[%c0_16, %c0_17] : memref<8x32xf32, #tpu.memory_space<vmem>>, vector<8x32xf32>
      tpu.vector_store %arg10[%c0_16, %c0_17], %18 {strides = array<i32>} : memref<8x32xf32, #tpu.memory_space<vmem>>, vector<8x32xf32>,
    } else {
    }
    %c0 = arith.constant 0 : index
    %c0_1 = arith.constant 0 : index
    %3 = vector.load %arg1[%c0, %c0_1] : memref<16x8xf32, #tpu.memory_space<vmem>>, vector<16x8xf32>
    %c0_2 = arith.constant 0 : index
    %c0_3 = arith.constant 0 : index
    %4 = vector.load %arg3[%c0_2, %c0_3] : memref<8x32xf32, #tpu.memory_space<vmem>>, vector<8x32xf32>
    %cst = arith.constant dense<0.000000e+00> : vector<16x32xf32>
    %5 = tpu.matmul %3, %4, %cst {dimension_numbers = #tpu.dot_dimension_numbers<[1], [0], [0], [1], [0, 0, 1, 1], [], []>} : vector<16x8xf32>, vector<8x32xf32>, vector<16x32xf32> -> vector<16x32xf32>
    %c0_4 = arith.constant 0 : index
    %c0_5 = arith.constant 0 : index
    %6 = vector.load %arg4[%c0_4, %c0_5] : memref<1x32xf32, #tpu.memory_space<vmem>>, vector<1x32xf32>
    %7 = vector.broadcast %6 : vector<1x32xf32> to vector<16x32xf32>
    %8 = arith.addf %5, %7 : vector<16x32xf32>
    %c0_6 = arith.constant 0 : index
    %c0_7 = arith.constant 0 : index
    %9 = vector.load %arg10[%c0_6, %c0_7] : memref<8x32xf32, #tpu.memory_space<vmem>>, vector<8x32xf32>
    %c0_8 = arith.constant 0 : index
    %c0_9 = arith.constant 0 : index
    %10 = vector.load %arg2[%c0_8, %c0_9] : memref<16x8xbf16, #tpu.memory_space<vmem>>, vector<16x8xbf16>
    %11 = arith.truncf %8 : vector<16x32xf32> to vector<16x32xbf16>
    %cst_10 = arith.constant dense<0.000000e+00> : vector<8x32xf32>
    %12 = tpu.matmul %10, %11, %cst_10 {dimension_numbers = #tpu.dot_dimension_numbers<[0], [0], [1], [1], [0, 1, 1, 1], [], []>} : vector<16x8xbf16>, vector<16x32xbf16>, vector<8x32xf32> -> vector<8x32xf32>
    %13 = arith.addf %9, %12 : vector<8x32xf32>
    %c0_11 = arith.constant 0 : index
    %c0_12 = arith.constant 0 : index
    %14 = vector.load %arg10[%c0_11, %c0_12] : memref<8x32xf32, #tpu.memory_space<vmem>>, vector<8x32xf32>
    tpu.vector_store %arg10[%c0_11, %c0_12], %13 {strides = array<i32>} : memref<8x32xf32, #tpu.memory_space<vmem>>, vector<8x32xf32>,
    %c0_i32_13 = arith.constant 0 : i32
    %15 = arith.cmpi eq, %arg0, %c0_i32_13 : i32
    %16 = arith.extui %15 : i1 to i32
    %c0_i32_14 = arith.constant 0 : i32
    %17 = arith.cmpi ne, %16, %c0_i32_14 : i32
    scf.if %17 {
      %c0_15 = arith.constant 0 : index
      %c0_16 = arith.constant 0 : index
      %18 = vector.load %arg10[%c0_15, %c0_16] : memref<8x32xf32, #tpu.memory_space<vmem>>, vector<8x32xf32>
      %c0_17 = arith.constant 0 : index
      %c0_18 = arith.constant 0 : index
      %19 = vector.load %arg5[%c0_17, %c0_18] : memref<8x1xf32, #tpu.memory_space<vmem>>, vector<8x1xf32>
      %20 = vector.broadcast %19 : vector<8x1xf32> to vector<8x32xf32>
      %21 = arith.mulf %18, %20 : vector<8x32xf32>
      %c0_19 = arith.constant 0 : index
      %c0_20 = arith.constant 0 : index
      %22 = vector.load %arg6[%c0_19, %c0_20] : memref<32x2xf32, #tpu.memory_space<vmem>>, vector<32x2xf32>
      %cst_21 = arith.constant dense<0.000000e+00> : vector<8x2xf32>
      %23 = tpu.matmul %21, %22, %cst_21 {dimension_numbers = #tpu.dot_dimension_numbers<[1], [0], [0], [1], [0, 0, 1, 1], [], []>} : vector<8x32xf32>, vector<32x2xf32>, vector<8x2xf32> -> vector<8x2xf32>
      %cst_22 = arith.constant 0.000000e+00 : f32
      %24 = vector.broadcast %cst_22 : f32 to vector<8x2xf32>
      %25 = arith.cmpf oge, %23, %24 : vector<8x2xf32>
      %cst_23 = arith.constant 2.000000e-01 : f32
      %26 = vector.broadcast %cst_23 : f32 to vector<8x2xf32>
      %27 = arith.mulf %26, %23 : vector<8x2xf32>
      %28 = arith.select %25, %23, %27 : vector<8x2xi1>, vector<8x2xf32>
      %cst_24 = arith.constant dense<0xFF800000> : vector<2xf32>
      %29 = vector.multi_reduction <maximumf>, %28, %cst_24 [0] : vector<8x2xf32> to vector<2xf32>
      %30 = vector.shape_cast %29 : vector<2xf32> to vector<1x2xf32>
      %31 = vector.broadcast %30 : vector<1x2xf32> to vector<8x2xf32>
      %32 = arith.subf %28, %31 : vector<8x2xf32>
      %33 = math.exp %32 : vector<8x2xf32>
      %34 = arith.truncf %33 : vector<8x2xf32> to vector<8x2xbf16>
      %c0_25 = arith.constant 0 : index
      %c0_26 = arith.constant 0 : index
      %35 = vector.load %arg9[%c0_25, %c0_26] : memref<8x2xbf16, #tpu.memory_space<vmem>>, vector<8x2xbf16>
      tpu.vector_store %arg9[%c0_25, %c0_26], %34 {strides = array<i32>} : memref<8x2xbf16, #tpu.memory_space<vmem>>, vector<8x2xbf16>,
      %c0_27 = arith.constant 0 : index
      %c0_28 = arith.constant 0 : index
      %36 = vector.load %arg7[%c0_27, %c0_28] : memref<2x32xf32, #tpu.memory_space<vmem>>, vector<2x32xf32>
      %cst_29 = arith.constant dense<0.000000e+00> : vector<8x32xf32>
      %37 = tpu.matmul %33, %36, %cst_29 {dimension_numbers = #tpu.dot_dimension_numbers<[1], [0], [0], [1], [0, 0, 1, 1], [], []>} : vector<8x2xf32>, vector<2x32xf32>, vector<8x32xf32> -> vector<8x32xf32>
      %38 = arith.mulf %21, %37 : vector<8x32xf32>
      %39 = arith.truncf %38 : vector<8x32xf32> to vector<8x32xbf16>
      %c0_30 = arith.constant 0 : index
      %c0_31 = arith.constant 0 : index
      %40 = vector.load %arg8[%c0_30, %c0_31] : memref<8x32xbf16, #tpu.memory_space<vmem>>, vector<8x32xbf16>
      tpu.vector_store %arg8[%c0_30, %c0_31], %39 {strides = array<i32>} : memref<8x32xbf16, #tpu.memory_space<vmem>>, vector<8x32xbf16>,
    } else {
    }
    return
  }
  func.func @transform_0(%arg0: i32) -> (i32, i32) {
    %c0_i32 = arith.constant 0 : i32
    %c0_i32_0 = arith.constant 0 : i32
    return %arg0, %c0_i32 : i32, i32
  }
  func.func @transform_1(%arg0: i32) -> (i32, i32) {
    %c0_i32 = arith.constant 0 : i32
    %c0_i32_0 = arith.constant 0 : i32
    return %arg0, %c0_i32 : i32, i32
  }
  func.func @transform_2(%arg0: i32) -> (i32, i32) {
    %c0_i32 = arith.constant 0 : i32
    %c0_i32_0 = arith.constant 0 : i32
    %c0_i32_1 = arith.constant 0 : i32
    return %c0_i32, %c0_i32_0 : i32, i32
  }
  func.func @transform_3(%arg0: i32) -> (i32, i32) {
    %c0_i32 = arith.constant 0 : i32
    %c0_i32_0 = arith.constant 0 : i32
    %c0_i32_1 = arith.constant 0 : i32
    return %c0_i32, %c0_i32_0 : i32, i32
  }
  func.func @transform_4(%arg0: i32) -> (i32, i32) {
    %c0_i32 = arith.constant 0 : i32
    %c0_i32_0 = arith.constant 0 : i32
    %c0_i32_1 = arith.constant 0 : i32
    return %c0_i32, %c0_i32_0 : i32, i32
  }
  func.func @transform_5(%arg0: i32) -> (i32, i32) {
    %c0_i32 = arith.constant 0 : i32
    %c0_i32_0 = arith.constant 0 : i32
    %c0_i32_1 = arith.constant 0 : i32
    return %c0_i32, %c0_i32_0 : i32, i32
  }
  func.func @transform_6(%arg0: i32) -> (i32, i32) {
    %c0_i32 = arith.constant 0 : i32
    %c0_i32_0 = arith.constant 0 : i32
    %c0_i32_1 = arith.constant 0 : i32
    return %c0_i32, %c0_i32_0 : i32, i32
  }
  func.func @transform_7(%arg0: i32) -> (i32, i32) {
    %c0_i32 = arith.constant 0 : i32
    %c0_i32_0 = arith.constant 0 : i32
    %c0_i32_1 = arith.constant 0 : i32
    return %c0_i32, %c0_i32_0 : i32, i32
  }
  func.func @transform_8(%arg0: i32) -> (i32, i32) {
    %c0_i32 = arith.constant 0 : i32
    %c0_i32_0 = arith.constant 0 : i32
    %c0_i32_1 = arith.constant 0 : i32
    return %c0_i32, %c0_i32_0 : i32, i32
  }
}

module attributes {stable_mosaic.version = 11 : i64} {
  func.func @_edge_kernel(%arg0: i32, %arg1: memref<16x32xf32, #tpu.memory_space<vmem>>, %arg2: memref<16x8xbf16, #tpu.memory_space<vmem>>, %arg3: memref<32x4xf32, #tpu.memory_space<vmem>>, %arg4: memref<1x4xf32, #tpu.memory_space<vmem>>, %arg5: memref<8x1xf32, #tpu.memory_space<vmem>>, %arg6: memref<4x1xf32, #tpu.memory_space<vmem>>, %arg7: memref<1x4xf32, #tpu.memory_space<vmem>>, %arg8: memref<8x4xbf16, #tpu.memory_space<vmem>>, %arg9: memref<8x1xbf16, #tpu.memory_space<vmem>>, %arg10: memref<8x4xf32, #tpu.memory_space<vmem>>) attributes {dimension_semantics = [#tpu.dimension_semantics<arbitrary>], iteration_bounds = array<i64: 1>, scalar_prefetch = 0 : i64, scratch_operands = 1 : i64, tpu.core_type = #tpu.core_type<tc>, window_params = [{transform_indices = @transform_0, window_bounds = array<i64: 16, 32>}, {transform_indices = @transform_1, window_bounds = array<i64: 16, 8>}, {pipeline_mode = #tpu.pipeline_mode<synchronous>, transform_indices = @transform_2, window_bounds = array<i64: 32, 4>}, {pipeline_mode = #tpu.pipeline_mode<synchronous>, transform_indices = @transform_3, window_bounds = array<i64: 1, 4>}, {pipeline_mode = #tpu.pipeline_mode<synchronous>, transform_indices = @transform_4, window_bounds = array<i64: 8, 1>}, {pipeline_mode = #tpu.pipeline_mode<synchronous>, transform_indices = @transform_5, window_bounds = array<i64: 4, 1>}, {pipeline_mode = #tpu.pipeline_mode<synchronous>, transform_indices = @transform_6, window_bounds = array<i64: 1, 4>}, {pipeline_mode = #tpu.pipeline_mode<synchronous>, transform_indices = @transform_7, window_bounds = array<i64: 8, 4>}, {pipeline_mode = #tpu.pipeline_mode<synchronous>, transform_indices = @transform_8, window_bounds = array<i64: 8, 1>}]} {
    %c0_i32 = arith.constant 0 : i32
    %0 = arith.cmpi eq, %arg0, %c0_i32 : i32
    %1 = arith.extui %0 : i1 to i32
    %c0_i32_0 = arith.constant 0 : i32
    %2 = arith.cmpi ne, %1, %c0_i32_0 : i32
    scf.if %2 {
      %cst_15 = arith.constant 0.000000e+00 : f32
      %18 = vector.broadcast %cst_15 : f32 to vector<8x4xf32>
      %c0_16 = arith.constant 0 : index
      %c0_17 = arith.constant 0 : index
      %19 = vector.load %arg10[%c0_16, %c0_17] : memref<8x4xf32, #tpu.memory_space<vmem>>, vector<8x4xf32>
      tpu.vector_store %arg10[%c0_16, %c0_17], %18 {strides = array<i32>} : memref<8x4xf32, #tpu.memory_space<vmem>>, vector<8x4xf32>,
    } else {
    }
    %c0 = arith.constant 0 : index
    %c0_1 = arith.constant 0 : index
    %3 = vector.load %arg1[%c0, %c0_1] : memref<16x32xf32, #tpu.memory_space<vmem>>, vector<16x32xf32>
    %c0_2 = arith.constant 0 : index
    %c0_3 = arith.constant 0 : index
    %4 = vector.load %arg3[%c0_2, %c0_3] : memref<32x4xf32, #tpu.memory_space<vmem>>, vector<32x4xf32>
    %cst = arith.constant dense<0.000000e+00> : vector<16x4xf32>
    %5 = tpu.matmul %3, %4, %cst {dimension_numbers = #tpu.dot_dimension_numbers<[1], [0], [0], [1], [0, 0, 1, 1], [], []>} : vector<16x32xf32>, vector<32x4xf32>, vector<16x4xf32> -> vector<16x4xf32>
    %c0_4 = arith.constant 0 : index
    %c0_5 = arith.constant 0 : index
    %6 = vector.load %arg4[%c0_4, %c0_5] : memref<1x4xf32, #tpu.memory_space<vmem>>, vector<1x4xf32>
    %7 = vector.broadcast %6 : vector<1x4xf32> to vector<16x4xf32>
    %8 = arith.addf %5, %7 : vector<16x4xf32>
    %c0_6 = arith.constant 0 : index
    %c0_7 = arith.constant 0 : index
    %9 = vector.load %arg10[%c0_6, %c0_7] : memref<8x4xf32, #tpu.memory_space<vmem>>, vector<8x4xf32>
    %c0_8 = arith.constant 0 : index
    %c0_9 = arith.constant 0 : index
    %10 = vector.load %arg2[%c0_8, %c0_9] : memref<16x8xbf16, #tpu.memory_space<vmem>>, vector<16x8xbf16>
    %11 = arith.truncf %8 : vector<16x4xf32> to vector<16x4xbf16>
    %cst_10 = arith.constant dense<0.000000e+00> : vector<8x4xf32>
    %12 = tpu.matmul %10, %11, %cst_10 {dimension_numbers = #tpu.dot_dimension_numbers<[0], [0], [1], [1], [0, 1, 1, 1], [], []>} : vector<16x8xbf16>, vector<16x4xbf16>, vector<8x4xf32> -> vector<8x4xf32>
    %13 = arith.addf %9, %12 : vector<8x4xf32>
    %c0_11 = arith.constant 0 : index
    %c0_12 = arith.constant 0 : index
    %14 = vector.load %arg10[%c0_11, %c0_12] : memref<8x4xf32, #tpu.memory_space<vmem>>, vector<8x4xf32>
    tpu.vector_store %arg10[%c0_11, %c0_12], %13 {strides = array<i32>} : memref<8x4xf32, #tpu.memory_space<vmem>>, vector<8x4xf32>,
    %c0_i32_13 = arith.constant 0 : i32
    %15 = arith.cmpi eq, %arg0, %c0_i32_13 : i32
    %16 = arith.extui %15 : i1 to i32
    %c0_i32_14 = arith.constant 0 : i32
    %17 = arith.cmpi ne, %16, %c0_i32_14 : i32
    scf.if %17 {
      %c0_15 = arith.constant 0 : index
      %c0_16 = arith.constant 0 : index
      %18 = vector.load %arg10[%c0_15, %c0_16] : memref<8x4xf32, #tpu.memory_space<vmem>>, vector<8x4xf32>
      %c0_17 = arith.constant 0 : index
      %c0_18 = arith.constant 0 : index
      %19 = vector.load %arg5[%c0_17, %c0_18] : memref<8x1xf32, #tpu.memory_space<vmem>>, vector<8x1xf32>
      %20 = vector.broadcast %19 : vector<8x1xf32> to vector<8x4xf32>
      %21 = arith.mulf %18, %20 : vector<8x4xf32>
      %c0_19 = arith.constant 0 : index
      %c0_20 = arith.constant 0 : index
      %22 = vector.load %arg6[%c0_19, %c0_20] : memref<4x1xf32, #tpu.memory_space<vmem>>, vector<4x1xf32>
      %cst_21 = arith.constant dense<0.000000e+00> : vector<8x1xf32>
      %23 = tpu.matmul %21, %22, %cst_21 {dimension_numbers = #tpu.dot_dimension_numbers<[1], [0], [0], [1], [0, 0, 1, 1], [], []>} : vector<8x4xf32>, vector<4x1xf32>, vector<8x1xf32> -> vector<8x1xf32>
      %cst_22 = arith.constant 0.000000e+00 : f32
      %24 = vector.broadcast %cst_22 : f32 to vector<8x1xf32>
      %25 = arith.cmpf oge, %23, %24 : vector<8x1xf32>
      %cst_23 = arith.constant 2.000000e-01 : f32
      %26 = vector.broadcast %cst_23 : f32 to vector<8x1xf32>
      %27 = arith.mulf %26, %23 : vector<8x1xf32>
      %28 = arith.select %25, %23, %27 : vector<8x1xi1>, vector<8x1xf32>
      %cst_24 = arith.constant dense<0xFF800000> : vector<1xf32>
      %29 = vector.multi_reduction <maximumf>, %28, %cst_24 [0] : vector<8x1xf32> to vector<1xf32>
      %30 = vector.shape_cast %29 : vector<1xf32> to vector<1x1xf32>
      %31 = vector.broadcast %30 : vector<1x1xf32> to vector<8x1xf32>
      %32 = arith.subf %28, %31 : vector<8x1xf32>
      %33 = math.exp %32 : vector<8x1xf32>
      %34 = arith.truncf %33 : vector<8x1xf32> to vector<8x1xbf16>
      %c0_25 = arith.constant 0 : index
      %c0_26 = arith.constant 0 : index
      %35 = vector.load %arg9[%c0_25, %c0_26] : memref<8x1xbf16, #tpu.memory_space<vmem>>, vector<8x1xbf16>
      tpu.vector_store %arg9[%c0_25, %c0_26], %34 {strides = array<i32>} : memref<8x1xbf16, #tpu.memory_space<vmem>>, vector<8x1xbf16>,
      %c0_27 = arith.constant 0 : index
      %c0_28 = arith.constant 0 : index
      %36 = vector.load %arg7[%c0_27, %c0_28] : memref<1x4xf32, #tpu.memory_space<vmem>>, vector<1x4xf32>
      %cst_29 = arith.constant dense<0.000000e+00> : vector<8x4xf32>
      %37 = tpu.matmul %33, %36, %cst_29 {dimension_numbers = #tpu.dot_dimension_numbers<[1], [0], [0], [1], [0, 0, 1, 1], [], []>} : vector<8x1xf32>, vector<1x4xf32>, vector<8x4xf32> -> vector<8x4xf32>
      %38 = arith.mulf %21, %37 : vector<8x4xf32>
      %39 = arith.truncf %38 : vector<8x4xf32> to vector<8x4xbf16>
      %c0_30 = arith.constant 0 : index
      %c0_31 = arith.constant 0 : index
      %40 = vector.load %arg8[%c0_30, %c0_31] : memref<8x4xbf16, #tpu.memory_space<vmem>>, vector<8x4xbf16>
      tpu.vector_store %arg8[%c0_30, %c0_31], %39 {strides = array<i32>} : memref<8x4xbf16, #tpu.memory_space<vmem>>, vector<8x4xbf16>,
    } else {
    }
    return
  }
  func.func @transform_0(%arg0: i32) -> (i32, i32) {
    %c0_i32 = arith.constant 0 : i32
    %c0_i32_0 = arith.constant 0 : i32
    return %arg0, %c0_i32 : i32, i32
  }
  func.func @transform_1(%arg0: i32) -> (i32, i32) {
    %c0_i32 = arith.constant 0 : i32
    %c0_i32_0 = arith.constant 0 : i32
    return %arg0, %c0_i32 : i32, i32
  }
  func.func @transform_2(%arg0: i32) -> (i32, i32) {
    %c0_i32 = arith.constant 0 : i32
    %c0_i32_0 = arith.constant 0 : i32
    %c0_i32_1 = arith.constant 0 : i32
    return %c0_i32, %c0_i32_0 : i32, i32
  }
  func.func @transform_3(%arg0: i32) -> (i32, i32) {
    %c0_i32 = arith.constant 0 : i32
    %c0_i32_0 = arith.constant 0 : i32
    %c0_i32_1 = arith.constant 0 : i32
    return %c0_i32, %c0_i32_0 : i32, i32
  }
  func.func @transform_4(%arg0: i32) -> (i32, i32) {
    %c0_i32 = arith.constant 0 : i32
    %c0_i32_0 = arith.constant 0 : i32
    %c0_i32_1 = arith.constant 0 : i32
    return %c0_i32, %c0_i32_0 : i32, i32
  }
  func.func @transform_5(%arg0: i32) -> (i32, i32) {
    %c0_i32 = arith.constant 0 : i32
    %c0_i32_0 = arith.constant 0 : i32
    %c0_i32_1 = arith.constant 0 : i32
    return %c0_i32, %c0_i32_0 : i32, i32
  }
  func.func @transform_6(%arg0: i32) -> (i32, i32) {
    %c0_i32 = arith.constant 0 : i32
    %c0_i32_0 = arith.constant 0 : i32
    %c0_i32_1 = arith.constant 0 : i32
    return %c0_i32, %c0_i32_0 : i32, i32
  }
  func.func @transform_7(%arg0: i32) -> (i32, i32) {
    %c0_i32 = arith.constant 0 : i32
    %c0_i32_0 = arith.constant 0 : i32
    %c0_i32_1 = arith.constant 0 : i32
    return %c0_i32, %c0_i32_0 : i32, i32
  }
  func.func @transform_8(%arg0: i32) -> (i32, i32) {
    %c0_i32 = arith.constant 0 : i32
    %c0_i32_0 = arith.constant 0 : i32
    %c0_i32_1 = arith.constant 0 : i32
    return %c0_i32, %c0_i32_0 : i32, i32
  }
}

module attributes {stable_mosaic.version = 11 : i64} {
  func.func @_vertex_kernel(%arg0: i32, %arg1: memref<16x8xbf16, #tpu.memory_space<vmem>>, %arg2: memref<8x4xbf16, #tpu.memory_space<vmem>>, %arg3: memref<8x1xbf16, #tpu.memory_space<vmem>>, %arg4: memref<1x4xf32, #tpu.memory_space<vmem>>, %arg5: memref<16x4xf32, #tpu.memory_space<vmem>>) attributes {dimension_semantics = [#tpu.dimension_semantics<parallel>], iteration_bounds = array<i64: 1>, scalar_prefetch = 0 : i64, scratch_operands = 0 : i64, tpu.core_type = #tpu.core_type<tc>, window_params = [{transform_indices = @transform_0, window_bounds = array<i64: 16, 8>}, {pipeline_mode = #tpu.pipeline_mode<synchronous>, transform_indices = @transform_1, window_bounds = array<i64: 8, 4>}, {pipeline_mode = #tpu.pipeline_mode<synchronous>, transform_indices = @transform_2, window_bounds = array<i64: 8, 1>}, {pipeline_mode = #tpu.pipeline_mode<synchronous>, transform_indices = @transform_3, window_bounds = array<i64: 1, 4>}, {transform_indices = @transform_4, window_bounds = array<i64: 16, 4>}]} {
    %c0 = arith.constant 0 : index
    %c0_0 = arith.constant 0 : index
    %0 = vector.load %arg1[%c0, %c0_0] : memref<16x8xbf16, #tpu.memory_space<vmem>>, vector<16x8xbf16>
    %c0_1 = arith.constant 0 : index
    %c0_2 = arith.constant 0 : index
    %1 = vector.load %arg2[%c0_1, %c0_2] : memref<8x4xbf16, #tpu.memory_space<vmem>>, vector<8x4xbf16>
    %cst = arith.constant dense<0.000000e+00> : vector<16x4xf32>
    %2 = tpu.matmul %0, %1, %cst {dimension_numbers = #tpu.dot_dimension_numbers<[1], [0], [0], [1], [0, 0, 1, 1], [], []>} : vector<16x8xbf16>, vector<8x4xbf16>, vector<16x4xf32> -> vector<16x4xf32>
    %c0_3 = arith.constant 0 : index
    %c0_4 = arith.constant 0 : index
    %3 = vector.load %arg3[%c0_3, %c0_4] : memref<8x1xbf16, #tpu.memory_space<vmem>>, vector<8x1xbf16>
    %cst_5 = arith.constant dense<0.000000e+00> : vector<16x1xf32>
    %4 = tpu.matmul %0, %3, %cst_5 {dimension_numbers = #tpu.dot_dimension_numbers<[1], [0], [0], [1], [0, 0, 1, 1], [], []>} : vector<16x8xbf16>, vector<8x1xbf16>, vector<16x1xf32> -> vector<16x1xf32>
    %c0_6 = arith.constant 0 : index
    %c0_7 = arith.constant 0 : index
    %5 = vector.load %arg4[%c0_6, %c0_7] : memref<1x4xf32, #tpu.memory_space<vmem>>, vector<1x4xf32>
    %cst_8 = arith.constant dense<0.000000e+00> : vector<16x4xf32>
    %6 = tpu.matmul %4, %5, %cst_8 {dimension_numbers = #tpu.dot_dimension_numbers<[1], [0], [0], [1], [0, 0, 1, 1], [], []>} : vector<16x1xf32>, vector<1x4xf32>, vector<16x4xf32> -> vector<16x4xf32>
    %cst_9 = arith.constant 9.99999996E-13 : f32
    %7 = vector.broadcast %cst_9 : f32 to vector<16x4xf32>
    %8 = arith.maximumf %6, %7 : vector<16x4xf32>
    %9 = tpu.reciprocal %8 {approx = true} : vector<16x4xf32> -> vector<16x4xf32>
    %10 = arith.mulf %2, %9 : vector<16x4xf32>
    %cst_10 = arith.constant 0.000000e+00 : f32
    %11 = vector.broadcast %cst_10 : f32 to vector<16x4xf32>
    %12 = arith.cmpf ogt, %10, %11 : vector<16x4xf32>
    %cst_11 = arith.constant 0.000000e+00 : f32
    %13 = vector.broadcast %cst_11 : f32 to vector<16x4xf32>
    %14 = arith.minimumf %10, %13 : vector<16x4xf32>
    %15 = math.exp %14 : vector<16x4xf32>
    %cst_12 = arith.constant 1.000000e+00 : f32
    %16 = vector.broadcast %cst_12 : f32 to vector<16x4xf32>
    %17 = arith.subf %15, %16 : vector<16x4xf32>
    %18 = arith.select %12, %10, %17 : vector<16x4xi1>, vector<16x4xf32>
    %c0_13 = arith.constant 0 : index
    %c0_14 = arith.constant 0 : index
    %19 = vector.load %arg5[%c0_13, %c0_14] : memref<16x4xf32, #tpu.memory_space<vmem>>, vector<16x4xf32>
    tpu.vector_store %arg5[%c0_13, %c0_14], %18 {strides = array<i32>} : memref<16x4xf32, #tpu.memory_space<vmem>>, vector<16x4xf32>,
    return
  }
  func.func @transform_0(%arg0: i32) -> (i32, i32) {
    %c0_i32 = arith.constant 0 : i32
    %c0_i32_0 = arith.constant 0 : i32
    return %arg0, %c0_i32 : i32, i32
  }
  func.func @transform_1(%arg0: i32) -> (i32, i32) {
    %c0_i32 = arith.constant 0 : i32
    %c0_i32_0 = arith.constant 0 : i32
    %c0_i32_1 = arith.constant 0 : i32
    return %c0_i32, %c0_i32_0 : i32, i32
  }
  func.func @transform_2(%arg0: i32) -> (i32, i32) {
    %c0_i32 = arith.constant 0 : i32
    %c0_i32_0 = arith.constant 0 : i32
    %c0_i32_1 = arith.constant 0 : i32
    return %c0_i32, %c0_i32_0 : i32, i32
  }
  func.func @transform_3(%arg0: i32) -> (i32, i32) {
    %c0_i32 = arith.constant 0 : i32
    %c0_i32_0 = arith.constant 0 : i32
    %c0_i32_1 = arith.constant 0 : i32
    return %c0_i32, %c0_i32_0 : i32, i32
  }
  func.func @transform_4(%arg0: i32) -> (i32, i32) {
    %c0_i32 = arith.constant 0 : i32
    %c0_i32_0 = arith.constant 0 : i32
    return %arg0, %c0_i32 : i32, i32
  }
}

</mosaic_0001>

<bundles_post_ra>
// kernel: unigat_forward.4
= control target key start
LH: loop header
LB: loop body
LE: loop exit
PB: predicated region body
PF: predicated region fallthrough
CT: control target
= control target key end

     0   :  { %vm45_vm0 = vcmask 64512   ;;  %v456_v4 = vmov 0.0   ;;  %vm457_vm1 = vmmov 0   ;;  %vm33_vm2 = vcmask 261120   ;;  %s552_s2 = inlined_call_operand.vmem [shape: f32[8,32], index: 2, kind: input, shape index: {}]   ;;  %s553_s0 = inlined_call_operand.vmem [shape: f32[16,8], index: 0, kind: input, shape index: {}]   ;;  %s554_s1 = inlined_call_operand.vmem [shape: bf16[16,8], index: 1, kind: input, shape index: {}]   ;;  %s555_s4 = inlined_call_operand.vmem [shape: f32[8,1], index: 4, kind: input, shape index: {}]   ;;  %s556_s3 = inlined_call_operand.vmem [shape: f32[1,32], index: 3, kind: input, shape index: {}]   ;;  %s557_s5 = inlined_call_operand.vmem [shape: f32[32,2], index: 5, kind: input, shape index: {}]   ;;  %s558_s6 = inlined_call_operand.vmem [shape: f32[2,32], index: 6, kind: input, shape index: {}]   ;;  %s559_s8 = inlined_call_operand.vmem [shape: bf16[8,2], index: 8, kind: output, shape index: {1}]   ;;  %s560_s7 = inlined_call_operand.vmem [shape: bf16[8,32], index: 7, kind: output, shape index: {0}]  }
   0x1   :  { %v37_v0 = vld [vmem:[%s552_s2] sm:$0xff]  ;;  %v36_v2 = vld [vmem:[%s553_s0 + $0x8] sm:$0xff]  ;;  %420 = vmatprep.subr.bf16.mxu1 %v456_v4  ;;  %422 = vmatprep.mubr.msk.bf16.mxu1 %vm457_vm1, %v456_v4  ;;  %v458_v5 = vmov 0   ;;  %34 = vst.msk [vmem:[#allocation2] sm:$0xff] %vm33_vm2, %v456_v4  ;;  %vm153_vm3 = vcmask 130048   ;;  %v459_v16 = vmov 0.0|0.0  }
   0x2   :  { %v35_v1 = vld [vmem:[%s553_s0] sm:$0xff]  ;;  %415 = vmatprep.subr.mxu0 %v37_v0  ;;  %v212_v15 = vld [vmem:[%s557_s5 + $0x8] sm:$0xff]  ;;  %v213_v18 = vld [vmem:[%s557_s5 + $0x10] sm:$0xff]  ;;  %vm309_vm4 = vcmask 1041408   ;;  %vm291_vm6 = vcmask 15360   ;;  %vm303_vm7 = vcmask 11264  }
   0x3   :  { %417 = vmatprep.mubr.msk.f32.mxu0 %vm45_vm0, %v35_v1  ;;  %v453_v3 = vld [vmem:[%s554_s1] sm:$0xff]   ;;  %416 = vmatpush3.msra.mxu0 %v37_v0  ;;  %v214_v19 = vld [vmem:[%s557_s5 + $0x18] sm:$0xff]  ;;  %vm385_vm8 = vcmask 257024  }
   0x4   :  { %418 = vmatmul.mubr.msk.f32.vlgmr.msra.gmra.mrb[0].mxu0 %vm45_vm0, %v36_v2  ;;  %137 = vxpose.xlu0.c.b16.start.end [1/1] (short) (narrow) %v453_v3, 16  ;;  %v204_v6 = vld [vmem:[%s555_s4] sm:$0xff]  ;;  %v446_v20 = vpack.c.bf16 %v214_v19, %v213_v18 }
   0x5   :  { %434 = vmatprep.mubr.msk.f32.mxu0 %vm457_vm1, %v456_v4  ;;  %v395_v7 = vld [vmem:[%s556_s3] ss:$0 sm:$0xff]  ;;  %442 = vmatprep.subr.bf16.mxu0 %v459_v16 }
   0x6   :  { %v211_v14 = vld [vmem:[%s557_s5] sm:$0xff] }
   0x7   :  { %v443_v17 = vpack.c.bf16 %v212_v15, %v211_v14  ;;  %v305_v30 = vld [vmem:[%s558_s6] sm:$0x3] }
   0x8   :  { %v127_v21 = vld [vmem:[#allocation2] sm:$0xff] }
   0x9   :  { %444 = vmatpush3.bf16.msra.mxu0 %v443_v17 }
   0xa   :  { %445 = vmatprep.subr.bf16.mxu0 %v459_v16 }
   0xd   :  { %452 = vset.pattern.permute.xlu0 %v458_v5  ;;  %447 = vmatpush3.bf16.msra.mxu0 %v446_v20 }
   0xe   :  { %207 = vperm.xlu0 %452, %v204_v6  }
  0x6a   :  { %v145_v13 = vpop.trf.xlu0 }
  0x8d   :  { %v208_v27 = vpop.permute.xlu0 %207 }
  0xd7   :  { %v419_v8 = vpop.f32.mrb[0].mxu0 }
  0xd8   :  { %v124_v9 = vadd.f32 %v419_v8, %v395_v7  ;;  %v118_v10 = vpop.f32.mrb[1].mxu0 }
  0xd9   :  { %v119_v11 = vadd.f32 %v395_v7, %v118_v10 }
  0xdb   :  { %v130_v12 = vpack.c.bf16 %v124_v9, %v119_v11 }
  0xdd   :  { %421 = vmatpush3.bf16.msra.mxu1 %v130_v12 }
  0xde   :  { %437 = vmatprep.subr.mxu1 %v456_v4 }
  0xe0   :  { %423 = vmatmul.mubr.msk.bf16.vlgmr.msra.gmra.mrb[0].mxu1 %vm153_vm3, %v145_v13 }
  0xe1   :  { %439 = vmatprep.mubr.msk.f32.mxu1 %vm457_vm1, %v456_v4  ;;  %438 = vmatpush3.msk.msra.mxu1 %vm309_vm4, %v305_v30 }
 0x1b3   :  { %v191_v22 = vpop.f32.mrb[0].mxu1 }
 0x1b4   :  { %v197_v23 = vadd.f32 %v191_v22, %v127_v21  ;;  %v424_v24 = vpop.f32.mrb[1].mxu1 }
 0x1b5   :  { %v194_v25 = vpop.f32.mrb[2].mxu1 }
 0x1b6   :  { %199 = vst.msk [vmem:[#allocation2] sm:$0xff] %vm33_vm2, %v197_v23  ;;  %v425_v26 = vpop.f32.mrb[3].mxu1 }
 0x1bd   :  { %v203_v28 = vld [vmem:[#allocation2] sm:$0xff] }
 0x1be   :  { %v210_v29 = vmul.f32 %v208_v27, %v203_v28 }
 0x1c0   :  { %435 = vmatmul.mubr.msk.f32.vlgmr.msra.gmra.mrb[2].mxu0 %vm33_vm2, %v210_v29 }
 0x293   :  { %v284_v31 = vpop.f32.mrb[2].mxu0 }
 0x294   :  { %vm288_vm5 = vcmp.ge.f32.partialorder %v284_v31, 0.0  ;;  %v289_v32 = vmul.f32 0.2, %v284_v31  ;;  %v436_v33 = vpop.f32.mrb[3].mxu0 }
 0x296   :  { %v290_v34 = vsel %vm288_vm5, %v284_v31, %v289_v32 }
 0x297   :  { %v292_v35 = vsel %vm291_vm6, %v290_v34, -inf }
 0x298   :  { %v293_v36 = vrot.slane %v292_v35, 4 }
 0x29a   :  { %v294_v37 = vmax.f32 %v292_v35, %v293_v36 }
 0x29c   :  { %v295_v38 = vrot.slane %v294_v37, 2 }
 0x29e   :  { %v296_v39 = vmax.f32 %v294_v37, %v295_v38 }
 0x2a0   :  { %v297_v40 = vrot.slane %v296_v39, 1 }
 0x2a2   :  { %v298_v41 = vmax.f32 %v296_v39, %v297_v40 }
 0x2a4   :  { %v299_v42 = vsub.f32 %v290_v34, %v298_v41 }
 0x2a6   :  { %v300_v43 = vmul.f32 1.442695, %v299_v42 }
 0x2a8   :  { %454 = vpow2.f32 %v300_v43 }
 0x2b2   :  { %v455_v44 = vpop.eup %454 }
 0x2b3   :  { %v302_v45 = vpack.c.bf16 %v455_v44, %v455_v44  ;;  %440 = vmatmul.mubr.msk.f32.vlgmr.msra.gmra.mrb[4].mxu1 %vm291_vm6, %v455_v44 }
 0x2b5   :  { %304 = vst.msk [vmem:[%s559_s8] sm:$0xf] %vm303_vm7, %v302_v45 }
 0x386   :  { %v379_v46 = vpop.f32.mrb[4].mxu1 }
 0x387   :  { %v383_v47 = vmul.f32 %v379_v46, %v210_v29  ;;  %v441_v48 = vpop.f32.mrb[5].mxu1 }
 0x389   :  { %v384_v49 = vpack.c.bf16 %v383_v47, %v383_v47 }
 0x38b   :  { %386 = vst.msk [vmem:[%s560_s7] sm:$0xf] %vm385_vm8, %v384_v49 }

// kernel: unigat_forward.5
= control target key start
LH: loop header
LB: loop body
LE: loop exit
PB: predicated region body
PF: predicated region fallthrough
CT: control target
= control target key end

     0   :  { %vm30_vm0 = vcmask 1043456   ;;  %v275_v0 = vmov 0.0   ;;  %vm276_vm1 = vmmov 0   ;;  %vm26_vm2 = vcmask 64512   ;;  %s322_s2 = inlined_call_operand.vmem [shape: bf16[8,2], index: 2, kind: input, shape index: {}]   ;;  %s323_s0 = inlined_call_operand.vmem [shape: bf16[16,8], index: 0, kind: input, shape index: {}]   ;;  %s324_s1 = inlined_call_operand.vmem [shape: bf16[8,32], index: 1, kind: input, shape index: {}]   ;;  %s325_s3 = inlined_call_operand.vmem [shape: f32[2,32], index: 3, kind: input, shape index: {}]   ;;  %s326_s4 = inlined_call_operand.vmem [shape: f32[16,32], index: 4, kind: output, shape index: {}]  }
   0x1   :  { %253 = vmatprep.subr.bf16.mxu1 %v275_v0  ;;  %v75_v1 = vld [vmem:[%s322_s2] sm:$0xf]  ;;  %255 = vmatprep.mubr.msk.bf16.mxu1 %vm276_vm1, %v275_v0  ;;  %vm128_vm3 = vcmask 1041408   ;;  %vm121_vm4 = vcmask 15360   ;;  %vm225_vm5 = vcmask 261120  }
   0x2   :  { %v77_v2 = vsel %vm30_vm0, %v75_v1, 0  ;;  %v266_v3 = vld [vmem:[%s323_s0] sm:$0xff]   ;;  %247 = vmatprep.subr.bf16.mxu0 %v275_v0  ;;  %249 = vmatprep.mubr.msk.bf16.mxu0 %vm276_vm1, %v275_v0 }
   0x3   :  { %v20_v4 = vld [vmem:[%s324_s1] sm:$0xf]  ;;  %254 = vmatpush3.bf16.msra.mxu1 %v77_v2 }
   0x4   :  { %v120_v5 = vld [vmem:[%s325_s3] sm:$0x3]  ;;  %v32_v6 = vsel %vm30_vm0, %v20_v4, 0 }
   0x5   :  { %248 = vmatpush3.bf16.msra.mxu0 %v32_v6 }
   0x6   :  { %259 = vmatprep.subr.msk.mxu0 %vm128_vm3, %v120_v5  ;;  %256 = vmatmul.mubr.msk.bf16.vlgmr.msra.gmra.mrb[0].mxu1 %vm26_vm2, %v266_v3 }
   0x8   :  { %250 = vmatmul.mubr.msk.bf16.vlgmr.msra.gmra.mrb[0].mxu0 %vm26_vm2, %v266_v3 }
   0x9   :  { %260 = vmatpush3.msk.msra.mxu0 %vm128_vm3, %v120_v5 }
  0xd9   :  { %v113_v7 = vpop.f32.mrb[0].mxu1 }
  0xda   :  { %v257_v8 = vpop.f32.mrb[1].mxu1  ;;  %261 = vmatprep.mubr.msk.f32.mxu0 %vm121_vm4, %v113_v7 }
  0xdb   :  { %v68_v9 = vpop.f32.mrb[0].mxu0  ;;  %v116_v10 = vpop.f32.mrb[2].mxu1 }
  0xdc   :  { %v251_v11 = vpop.f32.mrb[1].mxu0  ;;  %v258_v12 = vpop.f32.mrb[3].mxu1  ;;  %262 = vmatmul.mubr.msk.f32.vlgmr.msra.gmra.mrb[4].mxu0 %vm121_vm4, %v116_v10 }
  0xdd   :  { %v71_v13 = vpop.f32.mrb[2].mxu0 }
  0xde   :  { %v252_v14 = vpop.f32.mrb[3].mxu0 }
 0x1af   :  { %v263_v15 = vpop.f32.mrb[4].mxu0 }
 0x1b0   :  { %v208_v16 = vmax.f32 %v263_v15, 1e-12  ;;  %v198_v17 = vpop.f32.mrb[5].mxu0 }
 0x1b1   :  { %v207_v18 = vmax.f32 %v198_v17, 1e-12 }
 0x1b2   :  { %267 = vrcp.f32 %v208_v16 }
 0x1b3   :  { %269 = vrcp.f32 %v207_v18 }
 0x1bc   :  { %v268_v19 = vpop.eup %267 }
 0x1bd   :  { %v270_v20 = vpop.eup %269  ;;  %v212_v21 = vmul.f32 %v268_v19, %v71_v13 }
 0x1be   :  { %v211_v22 = vmul.f32 %v270_v20, %v68_v9 }
 0x1bf   :  { %v216_v23 = vmin.f32 %v212_v21, 0.0  ;;  %vm214_vm6 = vcmp.gt.f32.partialorder %v212_v21, 0.0 }
 0x1c0   :  { %v215_v24 = vmin.f32 %v211_v22, 0.0  ;;  %vm213_vm7 = vcmp.gt.f32.partialorder %v211_v22, 0.0 }
 0x1c1   :  { %v219_v25 = vmul.f32 1.442695, %v216_v23 }
 0x1c2   :  { %v217_v26 = vmul.f32 1.442695, %v215_v24 }
 0x1c3   :  { %271 = vpow2.f32 %v219_v25 }
 0x1c4   :  { %273 = vpow2.f32 %v217_v26 }
 0x1cd   :  { %v272_v27 = vpop.eup %271 }
 0x1ce   :  { %v274_v28 = vpop.eup %273  ;;  %v239_v29 = vadd.f32 -1.0, %v272_v27 }
 0x1cf   :  { %v238_v30 = vadd.f32 -1.0, %v274_v28 }
 0x1d0   :  { %v224_v31 = vsel %vm214_vm6, %v212_v21, %v239_v29 }
 0x1d1   :  { %227 = vst.msk [vmem:[%s326_s4 + $0x8] sm:$0xff] %vm225_vm5, %v224_v31  ;;  %v223_v32 = vsel %vm213_vm7, %v211_v22, %v238_v30 }
 0x1d2   :  { %226 = vst.msk [vmem:[%s326_s4] sm:$0xff] %vm225_vm5, %v223_v32 }

// kernel: unigat_forward.6
= control target key start
LH: loop header
LB: loop body
LE: loop exit
PB: predicated region body
PF: predicated region fallthrough
CT: control target
= control target key end

     0   :  { %vm48_vm0 = vcmask 261120   ;;  %v462_v9 = vmov 0.0   ;;  %vm463_vm1 = vmmov 0   ;;  %vm33_vm2 = vcmask 31744   ;;  %s559_s2 = inlined_call_operand.vmem [shape: f32[32,4], index: 2, kind: input, shape index: {}]   ;;  %s560_s0 = inlined_call_operand.vmem [shape: f32[16,32], index: 0, kind: input, shape index: {}]   ;;  %s561_s1 = inlined_call_operand.vmem [shape: bf16[16,8], index: 1, kind: input, shape index: {}]   ;;  %s562_s4 = inlined_call_operand.vmem [shape: f32[8,1], index: 4, kind: input, shape index: {}]   ;;  %s563_s3 = inlined_call_operand.vmem [shape: f32[1,4], index: 3, kind: input, shape index: {}]   ;;  %s564_s5 = inlined_call_operand.vmem [shape: f32[4,1], index: 5, kind: input, shape index: {}]   ;;  %s565_s6 = inlined_call_operand.vmem [shape: f32[1,4], index: 6, kind: input, shape index: {}]   ;;  %s566_s8 = inlined_call_operand.vmem [shape: bf16[8,1], index: 8, kind: output, shape index: {1}]   ;;  %s567_s7 = inlined_call_operand.vmem [shape: bf16[8,4], index: 7, kind: output, shape index: {0}]  }
   0x1   :  { %v37_v0 = vld [vmem:[%s559_s2] sm:$0xff]  ;;  %v38_v1 = vld [vmem:[%s559_s2 + $0x8] sm:$0xff]  ;;  %v39_v2 = vld [vmem:[%s559_s2 + $0x10] sm:$0xff]  ;;  %431 = vmatprep.subr.bf16.mxu1 %v462_v9  ;;  %433 = vmatprep.mubr.msk.bf16.mxu1 %vm463_vm1, %v462_v9  ;;  %v464_v10 = vmov 0   ;;  %34 = vst.msk [vmem:[#allocation2] sm:$0xff] %vm33_vm2, %v462_v9  ;;  %vm156_vm3 = vcmask 130048  }
   0x2   :  { %v447_v3 = vpack.c.bf16 %v38_v1, %v37_v0  ;;  %v40_v4 = vld [vmem:[%s559_s2 + $0x18] sm:$0xff]  ;;  %v35_v5 = vld [vmem:[%s560_s0] sm:$0xff]  ;;  %v36_v8 = vld [vmem:[%s560_s0 + $0x8] sm:$0xff]  ;;  %vm218_vm4 = vcmask 1043456   ;;  %vm313_vm5 = vcmask 1040384   ;;  %vm295_vm7 = vcmask 7168  }
   0x3   :  { %v451_v6 = vpack.c.bf16 %v40_v4, %v39_v2  ;;  %428 = vmatprep.mubr.msk.f32.mxu0 %vm48_vm0, %v35_v5  ;;  %v459_v7 = vld [vmem:[%s561_s1] sm:$0xff]   ;;  %vm307_vm8 = vcmask 3072   ;;  %vm389_vm9 = vcmask 27648  }
   0x4   :  { %448 = vmatprep.subr.bf16.mxu0 %v447_v3  ;;  %140 = vxpose.xlu0.c.b16.start.end [1/1] (short) (narrow) %v459_v7, 16  ;;  %v207_v11 = vld [vmem:[%s562_s4] sm:$0xff] }
   0x5   :  { %450 = vmatpush3.bf16.msra.mxu0 %v447_v3  ;;  %v399_v12 = vld [vmem:[%s563_s3] ss:$0 sm:$0xff] }
   0x6   :  { %452 = vmatprep.subr.bf16.mxu0 %v451_v6  ;;  %v214_v19 = vld [vmem:[%s564_s5] sm:$0xf] }
   0x7   :  { %v309_v29 = vld [vmem:[%s565_s6] sm:$0x1] }
   0x8   :  { %v130_v20 = vld [vmem:[#allocation2] sm:$0xff] }
   0x9   :  { %454 = vmatpush3.bf16.msra.mxu0 %v451_v6 }
   0xa   :  { %437 = vmatprep.subr.mxu0 %v462_v9 }
   0xc   :  { %429 = vmatmul.mubr.msk.f32.vlgmr.msra.gmra.mrb[0].mxu0 %vm48_vm0, %v36_v8 }
   0xd   :  { %439 = vmatprep.mubr.msk.f32.mxu0 %vm463_vm1, %v462_v9  ;;  %458 = vset.pattern.permute.xlu0 %v464_v10 }
   0xe   :  { %210 = vperm.xlu0 %458, %v207_v11   ;;  %438 = vmatpush3.msk.msra.mxu0 %vm218_vm4, %v214_v19 }
  0x6a   :  { %v148_v18 = vpop.trf.xlu0 }
  0x8d   :  { %v211_v26 = vpop.permute.xlu0 %210 }
  0xdf   :  { %v430_v13 = vpop.f32.mrb[0].mxu0 }
  0xe0   :  { %v127_v14 = vadd.f32 %v430_v13, %v399_v12  ;;  %v121_v15 = vpop.f32.mrb[1].mxu0 }
  0xe1   :  { %v122_v16 = vadd.f32 %v399_v12, %v121_v15 }
  0xe3   :  { %v133_v17 = vpack.c.bf16 %v127_v14, %v122_v16 }
  0xe5   :  { %432 = vmatpush3.bf16.msra.mxu1 %v133_v17 }
  0xe6   :  { %442 = vmatprep.subr.mxu1 %v462_v9 }
  0xe8   :  { %434 = vmatmul.mubr.msk.bf16.vlgmr.msra.gmra.mrb[0].mxu1 %vm156_vm3, %v148_v18 }
  0xe9   :  { %444 = vmatprep.mubr.msk.f32.mxu1 %vm463_vm1, %v462_v9  ;;  %443 = vmatpush3.msk.msra.mxu1 %vm313_vm5, %v309_v29 }
 0x1bb   :  { %v194_v21 = vpop.f32.mrb[0].mxu1 }
 0x1bc   :  { %v200_v22 = vadd.f32 %v194_v21, %v130_v20  ;;  %v435_v23 = vpop.f32.mrb[1].mxu1 }
 0x1bd   :  { %v197_v24 = vpop.f32.mrb[2].mxu1 }
 0x1be   :  { %202 = vst.msk [vmem:[#allocation2] sm:$0xff] %vm33_vm2, %v200_v22  ;;  %v436_v25 = vpop.f32.mrb[3].mxu1 }
 0x1c5   :  { %v206_v27 = vld [vmem:[#allocation2] sm:$0xff] }
 0x1c6   :  { %v213_v28 = vmul.f32 %v211_v26, %v206_v27 }
 0x1c8   :  { %440 = vmatmul.mubr.msk.f32.vlgmr.msra.gmra.mrb[2].mxu0 %vm33_vm2, %v213_v28 }
 0x29b   :  { %v288_v30 = vpop.f32.mrb[2].mxu0 }
 0x29c   :  { %vm292_vm6 = vcmp.ge.f32.partialorder %v288_v30, 0.0  ;;  %v293_v31 = vmul.f32 0.2, %v288_v30  ;;  %v441_v32 = vpop.f32.mrb[3].mxu0 }
 0x29e   :  { %v294_v33 = vsel %vm292_vm6, %v288_v30, %v293_v31 }
 0x29f   :  { %v296_v34 = vsel %vm295_vm7, %v294_v33, -inf }
 0x2a0   :  { %v297_v35 = vrot.slane %v296_v34, 4 }
 0x2a2   :  { %v298_v36 = vmax.f32 %v296_v34, %v297_v35 }
 0x2a4   :  { %v299_v37 = vrot.slane %v298_v36, 2 }
 0x2a6   :  { %v300_v38 = vmax.f32 %v298_v36, %v299_v37 }
 0x2a8   :  { %v301_v39 = vrot.slane %v300_v38, 1 }
 0x2aa   :  { %v302_v40 = vmax.f32 %v300_v38, %v301_v39 }
 0x2ac   :  { %v303_v41 = vsub.f32 %v294_v33, %v302_v40 }
 0x2ae   :  { %v304_v42 = vmul.f32 1.442695, %v303_v41 }
 0x2b0   :  { %460 = vpow2.f32 %v304_v42 }
 0x2ba   :  { %v461_v43 = vpop.eup %460 }
 0x2bb   :  { %v306_v44 = vpack.c.bf16 %v461_v43, %v461_v43  ;;  %445 = vmatmul.mubr.msk.f32.vlgmr.msra.gmra.mrb[4].mxu1 %vm295_vm7, %v461_v43 }
 0x2bd   :  { %308 = vst.msk [vmem:[%s566_s8] sm:$0xf] %vm307_vm8, %v306_v44 }
 0x38e   :  { %v383_v45 = vpop.f32.mrb[4].mxu1 }
 0x38f   :  { %v387_v46 = vmul.f32 %v383_v45, %v213_v28  ;;  %v446_v47 = vpop.f32.mrb[5].mxu1 }
 0x391   :  { %v388_v48 = vpack.c.bf16 %v387_v46, %v387_v46 }
 0x393   :  { %390 = vst.msk [vmem:[%s567_s7] sm:$0xf] %vm389_vm9, %v388_v48 }

// kernel: unigat_forward.7
= control target key start
LH: loop header
LB: loop body
LE: loop exit
PB: predicated region body
PF: predicated region fallthrough
CT: control target
= control target key end

     0   :  { %vm30_vm0 = vcmask 1043456   ;;  %v275_v0 = vmov 0.0   ;;  %vm276_vm1 = vmmov 0   ;;  %vm26_vm2 = vcmask 64512   ;;  %s322_s2 = inlined_call_operand.vmem [shape: bf16[8,1], index: 2, kind: input, shape index: {}]   ;;  %s323_s0 = inlined_call_operand.vmem [shape: bf16[16,8], index: 0, kind: input, shape index: {}]   ;;  %s324_s1 = inlined_call_operand.vmem [shape: bf16[8,4], index: 1, kind: input, shape index: {}]   ;;  %s325_s3 = inlined_call_operand.vmem [shape: f32[1,4], index: 3, kind: input, shape index: {}]   ;;  %s326_s4 = inlined_call_operand.vmem [shape: f32[16,4], index: 4, kind: output, shape index: {}]  }
   0x1   :  { %253 = vmatprep.subr.bf16.mxu1 %v275_v0  ;;  %v75_v1 = vld [vmem:[%s322_s2] sm:$0xf]  ;;  %255 = vmatprep.mubr.msk.bf16.mxu1 %vm276_vm1, %v275_v0  ;;  %vm128_vm3 = vcmask 1040384   ;;  %vm121_vm4 = vcmask 7168   ;;  %vm225_vm5 = vcmask 31744  }
   0x2   :  { %v77_v2 = vsel %vm30_vm0, %v75_v1, 0  ;;  %v266_v3 = vld [vmem:[%s323_s0] sm:$0xff]   ;;  %247 = vmatprep.subr.bf16.mxu0 %v275_v0  ;;  %249 = vmatprep.mubr.msk.bf16.mxu0 %vm276_vm1, %v275_v0 }
   0x3   :  { %v20_v4 = vld [vmem:[%s324_s1] sm:$0xf]  ;;  %254 = vmatpush3.bf16.msra.mxu1 %v77_v2 }
   0x4   :  { %v120_v5 = vld [vmem:[%s325_s3] sm:$0x1]  ;;  %v32_v6 = vsel %vm30_vm0, %v20_v4, 0 }
   0x5   :  { %248 = vmatpush3.bf16.msra.mxu0 %v32_v6 }
   0x6   :  { %259 = vmatprep.subr.msk.mxu0 %vm128_vm3, %v120_v5  ;;  %256 = vmatmul.mubr.msk.bf16.vlgmr.msra.gmra.mrb[0].mxu1 %vm26_vm2, %v266_v3 }
   0x8   :  { %250 = vmatmul.mubr.msk.bf16.vlgmr.msra.gmra.mrb[0].mxu0 %vm26_vm2, %v266_v3 }
   0x9   :  { %260 = vmatpush3.msk.msra.mxu0 %vm128_vm3, %v120_v5 }
  0xd9   :  { %v113_v7 = vpop.f32.mrb[0].mxu1 }
  0xda   :  { %v257_v8 = vpop.f32.mrb[1].mxu1  ;;  %261 = vmatprep.mubr.msk.f32.mxu0 %vm121_vm4, %v113_v7 }
  0xdb   :  { %v68_v9 = vpop.f32.mrb[0].mxu0  ;;  %v116_v10 = vpop.f32.mrb[2].mxu1 }
  0xdc   :  { %v251_v11 = vpop.f32.mrb[1].mxu0  ;;  %v258_v12 = vpop.f32.mrb[3].mxu1  ;;  %262 = vmatmul.mubr.msk.f32.vlgmr.msra.gmra.mrb[4].mxu0 %vm121_vm4, %v116_v10 }
  0xdd   :  { %v71_v13 = vpop.f32.mrb[2].mxu0 }
  0xde   :  { %v252_v14 = vpop.f32.mrb[3].mxu0 }
 0x1af   :  { %v263_v15 = vpop.f32.mrb[4].mxu0 }
 0x1b0   :  { %v208_v16 = vmax.f32 %v263_v15, 1e-12  ;;  %v198_v17 = vpop.f32.mrb[5].mxu0 }
 0x1b1   :  { %v207_v18 = vmax.f32 %v198_v17, 1e-12 }
 0x1b2   :  { %267 = vrcp.f32 %v208_v16 }
 0x1b3   :  { %269 = vrcp.f32 %v207_v18 }
 0x1bc   :  { %v268_v19 = vpop.eup %267 }
 0x1bd   :  { %v270_v20 = vpop.eup %269  ;;  %v212_v21 = vmul.f32 %v268_v19, %v71_v13 }
 0x1be   :  { %v211_v22 = vmul.f32 %v270_v20, %v68_v9 }
 0x1bf   :  { %v216_v23 = vmin.f32 %v212_v21, 0.0  ;;  %vm214_vm6 = vcmp.gt.f32.partialorder %v212_v21, 0.0 }
 0x1c0   :  { %v215_v24 = vmin.f32 %v211_v22, 0.0  ;;  %vm213_vm7 = vcmp.gt.f32.partialorder %v211_v22, 0.0 }
 0x1c1   :  { %v219_v25 = vmul.f32 1.442695, %v216_v23 }
 0x1c2   :  { %v217_v26 = vmul.f32 1.442695, %v215_v24 }
 0x1c3   :  { %271 = vpow2.f32 %v219_v25 }
 0x1c4   :  { %273 = vpow2.f32 %v217_v26 }
 0x1cd   :  { %v272_v27 = vpop.eup %271 }
 0x1ce   :  { %v274_v28 = vpop.eup %273  ;;  %v239_v29 = vadd.f32 -1.0, %v272_v27 }
 0x1cf   :  { %v238_v30 = vadd.f32 -1.0, %v274_v28 }
 0x1d0   :  { %v224_v31 = vsel %vm214_vm6, %v212_v21, %v239_v29 }
 0x1d1   :  { %227 = vst.msk [vmem:[%s326_s4 + $0x8] sm:$0xff] %vm225_vm5, %v224_v31  ;;  %v223_v32 = vsel %vm213_vm7, %v211_v22, %v238_v30 }
 0x1d2   :  { %226 = vst.msk [vmem:[%s326_s4] sm:$0xff] %vm225_vm5, %v223_v32 }

</bundles_post_ra>
